<compile_context>
chip_gen: v7x
topology: tpu7x:2x2x1
jax: 0.10.0
libtpu: 0.0.40
codegen_flags: <defaults>
</compile_context>

<pallas_src>
import functools
import math

import jax
import jax.numpy as jnp
from jax.experimental import pallas as pl
from jax.experimental.pallas import tpu as pltpu


_SQRT_2_OVER_PI = math.sqrt(2.0 / math.pi)


def _gelu_new(x):
    """GPT-2 'new' GELU (tanh approximation), matching transformer_lens gelu_new."""
    return 0.5 * x * (1.0 + jnp.tanh(_SQRT_2_OVER_PI * (x + 0.044715 * x * x * x)))


def _mlp_kernel(x_ref, w_in_ref, b_in_ref, w_out_ref, b_out_ref, o_ref, *,
                block_f, resident):
    """One (token-tile, d_mlp-tile) step of the fused MLP.

    x_ref     : VMEM [tm, d_model]            bf16
    w_in_ref  : VMEM [d_model, d_mlp|tf]      bf16 (full when resident)
    b_in_ref  : VMEM [1, d_mlp|tf]            f32
    w_out_ref : VMEM [d_mlp|tf, d_model]      bf16 (full when resident)
    b_out_ref : VMEM [1, d_model]             f32
    o_ref     : VMEM [tm, d_model]            f32, resident across axis 1
                                              (used directly as the accumulator)
    """
    j = pl.program_id(1)

    @pl.when(j == 0)
    def _():
        o_ref[...] = jnp.zeros_like(o_ref)

    if resident:
        # Weights live fully in VMEM; pick this step's d_mlp slice in-kernel.
        off = pl.multiple_of(j * block_f, block_f)
        w_in = w_in_ref[:, pl.ds(off, block_f)]
        w_out = w_out_ref[pl.ds(off, block_f), :]
        b_in = b_in_ref[:, pl.ds(off, block_f)]
    else:
        w_in = w_in_ref[...]
        w_out = w_out_ref[...]
        b_in = b_in_ref[...]

    # Matmul #1: bf16 x bf16 -> f32 accumulate on the MXU, then bias + gelu in f32.
    pre = jnp.dot(x_ref[...], w_in, preferred_element_type=jnp.float32)
    pre = pre + b_in.astype(jnp.float32)
    post = _gelu_new(pre)

    # Matmul #2: cast the activation slice to bf16 for the MXU, accumulate f32
    # directly into the resident output block.
    o_ref[...] += jnp.dot(post.astype(w_out.dtype), w_out,
                          preferred_element_type=jnp.float32)

    @pl.when(j == pl.num_programs(1) - 1)
    def _():
        o_ref[...] += b_out_ref[...].astype(jnp.float32)


def _choose_block_f(d_mlp, tf):
    """Largest multiple of 128 that divides d_mlp and is <= tf (full d_mlp fallback)."""
    k = min(tf, d_mlp)
    k = (k // 128) * 128
    while k >= 128:
        if d_mlp % k == 0:
            return k
        k -= 128
    return d_mlp


def _choose_block_m(m, tm):
    """Token-tile size: 16-row aligned, and >= 2 tiles for large M (v7x megacore)."""
    tm = max(16, (tm // 16) * 16)
    if m > tm:
        return tm
    bm = ((m + 15) // 16) * 16
    if m >= 512:
        # Split into at least 2 token tiles (256-aligned) so both TCs get work.
        half = (((m + 1) // 2) + 255) // 256 * 256
        bm = min(bm, half)
    return max(bm, 16)


def mlp_forward(x, w_in, b_in, w_out, b_out, *, tm=512, tf=1024,
                force_weight_streaming=False,
                vmem_limit_bytes=48 * 1024 * 1024):
    """Pallas equivalent of MLP.forward.

    x : [batch, pos, d_model] float32.  Returns [batch, pos, d_model] float32.
    Matmul inputs are cast to bf16 (MXU-native); accumulation is f32.
    """
    batch, pos, d_model = x.shape
    d_model_w, d_mlp = w_in.shape
    assert d_model == d_model_w
    assert w_out.shape == (d_mlp, d_model)
    assert b_in.shape == (d_mlp,)
    assert b_out.shape == (d_model,)

    m = batch * pos
    block_m = _choose_block_m(m, tm)
    m_pad = pl.cdiv(m, block_m) * block_m

    x_flat = x.reshape(m, d_model)
    if m_pad != m:
        # TODO(synk): replace the pad with a masked/partial last token tile to
        # avoid the extra HBM copy at very long sequence lengths.
        x_flat = jnp.pad(x_flat, ((0, m_pad - m), (0, 0)))

    # bf16 matmul inputs; biases stay f32 (added to the f32 accumulators).
    x_bf16 = x_flat.astype(jnp.bfloat16)
    w_in_bf16 = w_in.astype(jnp.bfloat16)
    w_out_bf16 = w_out.astype(jnp.bfloat16)
    b_in_2d = b_in.reshape(1, d_mlp).astype(jnp.float32)
    b_out_2d = b_out.reshape(1, d_model).astype(jnp.float32)

    block_f = _choose_block_f(d_mlp, tf)
    grid = (m_pad // block_m, d_mlp // block_f)

    # Keep both weight matrices fully VMEM-resident (fetched once for the whole
    # grid) when they fit the budget (GPT-2 small: ~9 MiB bf16); otherwise
    # stream [.., block_f] slices per reduction step.
    weight_resident_bytes = 2 * 2 * (d_model * d_mlp + d_mlp * d_model)  # bf16, 2 bufs
    resident = (not force_weight_streaming) and (
        weight_resident_bytes <= 28 * 1024 * 1024)

    if resident:
        w_in_spec = pl.BlockSpec((d_model, d_mlp), lambda i, j: (0, 0))
        b_in_spec = pl.BlockSpec((1, d_mlp), lambda i, j: (0, 0))
        w_out_spec = pl.BlockSpec((d_mlp, d_model), lambda i, j: (0, 0))
    else:
        w_in_spec = pl.BlockSpec((d_model, block_f), lambda i, j: (0, j))
        b_in_spec = pl.BlockSpec((1, block_f), lambda i, j: (0, j))
        w_out_spec = pl.BlockSpec((block_f, d_model), lambda i, j: (j, 0))

    kernel = functools.partial(_mlp_kernel, block_f=block_f, resident=resident)

    out_flat = pl.pallas_call(
        kernel,
        out_shape=jax.ShapeDtypeStruct((m_pad, d_model), jnp.float32),
        grid_spec=pltpu.PrefetchScalarGridSpec(
            num_scalar_prefetch=0,
            grid=grid,
            in_specs=[
                pl.BlockSpec((block_m, d_model), lambda i, j: (i, 0)),  # x tile
                w_in_spec,                                              # W_in
                b_in_spec,                                              # b_in
                w_out_spec,                                             # W_out
                pl.BlockSpec((1, d_model), lambda i, j: (0, 0)),        # b_out
            ],
            out_specs=pl.BlockSpec((block_m, d_model), lambda i, j: (i, 0)),
        ),
        compiler_params=pltpu.CompilerParams(
            # Token tiles are independent -> parallel (megacore);
            # d_mlp axis carries the output accumulator -> arbitrary.
            dimension_semantics=("parallel", "arbitrary"),
            vmem_limit_bytes=vmem_limit_bytes,
        ),
    )(x_bf16, w_in_bf16, b_in_2d, w_out_bf16, b_out_2d)

    return out_flat[:m].reshape(batch, pos, d_model)


def _mlp_reference(x, w_in, b_in, w_out, b_out):
    pre = jnp.einsum("bpd,dm->bpm", x, w_in) + b_in
    post = _gelu_new(pre)
    return jnp.einsum("bpm,md->bpd", post, w_out) + b_out


if __name__ == "__main__":
    # Small config consistent with the module's shapes (scaled-down gpt2-small).
    d_model = 128
    d_mlp = 512
    init_range = 0.02
    batch, pos = 2, 64

    key = jax.random.PRNGKey(0)
    k_x, k_win, k_bin, k_wout, k_bout = jax.random.split(key, 5)

    x = jax.random.normal(k_x, (batch, pos, d_model), dtype=jnp.float32)
    w_in = (init_range * jax.random.normal(k_win, (d_model, d_mlp))).astype(jnp.float32)
    w_out = (init_range * jax.random.normal(k_wout, (d_mlp, d_model))).astype(jnp.float32)
    # Module inits biases to zero; use small nonzero values to exercise the adds.
    b_in = (0.01 * jax.random.normal(k_bin, (d_mlp,))).astype(jnp.float32)
    b_out = (0.01 * jax.random.normal(k_bout, (d_model,))).astype(jnp.float32)

    ref = _mlp_reference(x, w_in, b_in, w_out, b_out)

    # Resident-weight path: tm=64, tf=256 -> grid (2 token tiles, 2 d_mlp tiles),
    # exercising both the parallel axis and the accumulator init/finalize.
    out = mlp_forward(x, w_in, b_in, w_out, b_out, tm=64, tf=256)
    out = jax.block_until_ready(out)
    assert out.shape == (batch, pos, d_model)
    assert out.dtype == jnp.float32
    err = float(jnp.max(jnp.abs(out - ref)))
    # bf16 matmul inputs with f32 accumulation: relaxed tolerance vs f32 reference.
    assert jnp.allclose(out, ref, atol=2e-2, rtol=2e-2), err

    # Streaming-weight fallback path (for very large d_model*d_mlp) — coverage.
    out2 = mlp_forward(x, w_in, b_in, w_out, b_out, tm=64, tf=256,
                       force_weight_streaming=True)
    out2 = jax.block_until_ready(out2)
    err2 = float(jnp.max(jnp.abs(out2 - ref)))
    assert jnp.allclose(out2, ref, atol=2e-2, rtol=2e-2), err2

    print("KERNEL_OK")
</pallas_src>

<mosaic_0001>
module attributes {stable_mosaic.version = 11 : i64} {
  func.func @_mlp_kernel(%arg0: i32, %arg1: i32, %arg2: memref<64x128xbf16, #tpu.memory_space<vmem>>, %arg3: memref<128x512xbf16, #tpu.memory_space<vmem>>, %arg4: memref<1x512xf32, #tpu.memory_space<vmem>>, %arg5: memref<512x128xbf16, #tpu.memory_space<vmem>>, %arg6: memref<1x128xf32, #tpu.memory_space<vmem>>, %arg7: memref<64x128xf32, #tpu.memory_space<vmem>>) attributes {dimension_semantics = [#tpu.dimension_semantics<parallel>, #tpu.dimension_semantics<arbitrary>], iteration_bounds = array<i64: 2, 2>, scalar_prefetch = 0 : i64, scratch_operands = 0 : i64, tpu.core_type = #tpu.core_type<tc>, window_params = [{transform_indices = @transform_0, window_bounds = array<i64: 64, 128>}, {pipeline_mode = #tpu.pipeline_mode<synchronous>, transform_indices = @transform_1, window_bounds = array<i64: 128, 512>}, {pipeline_mode = #tpu.pipeline_mode<synchronous>, transform_indices = @transform_2, window_bounds = array<i64: 1, 512>}, {pipeline_mode = #tpu.pipeline_mode<synchronous>, transform_indices = @transform_3, window_bounds = array<i64: 512, 128>}, {pipeline_mode = #tpu.pipeline_mode<synchronous>, transform_indices = @transform_4, window_bounds = array<i64: 1, 128>}, {transform_indices = @transform_5, window_bounds = array<i64: 64, 128>}]} {
    %c0_i32 = arith.constant 0 : i32
    %0 = arith.cmpi eq, %arg1, %c0_i32 : i32
    %1 = arith.extui %0 : i1 to i32
    %c0_i32_0 = arith.constant 0 : i32
    %2 = arith.cmpi ne, %1, %c0_i32_0 : i32
    scf.if %2 {
      %cst_15 = arith.constant 0.000000e+00 : f32
      %36 = vector.broadcast %cst_15 : f32 to vector<64x128xf32>
      %c0_16 = arith.constant 0 : index
      %c0_17 = arith.constant 0 : index
      %37 = vector.load %arg7[%c0_16, %c0_17] : memref<64x128xf32, #tpu.memory_space<vmem>>, vector<64x128xf32>
      tpu.vector_store %arg7[%c0_16, %c0_17], %36 {strides = array<i32>} : memref<64x128xf32, #tpu.memory_space<vmem>>, vector<64x128xf32>,
    } else {
    }
    %c256_i32 = arith.constant 256 : i32
    %3 = arith.muli %arg1, %c256_i32 : i32
    %4 = tpu.assume_multiple %3, 256 : i32
    %c0 = arith.constant 0 : index
    %5 = arith.index_cast %4 : i32 to index
    %6 = vector.load %arg3[%c0, %5] : memref<128x512xbf16, #tpu.memory_space<vmem>>, vector<128x256xbf16>
    %7 = arith.index_cast %4 : i32 to index
    %c0_1 = arith.constant 0 : index
    %8 = vector.load %arg5[%7, %c0_1] : memref<512x128xbf16, #tpu.memory_space<vmem>>, vector<256x128xbf16>
    %c0_2 = arith.constant 0 : index
    %9 = arith.index_cast %4 : i32 to index
    %10 = vector.load %arg4[%c0_2, %9] : memref<1x512xf32, #tpu.memory_space<vmem>>, vector<1x256xf32>
    %c0_3 = arith.constant 0 : index
    %c0_4 = arith.constant 0 : index
    %11 = vector.load %arg2[%c0_3, %c0_4] : memref<64x128xbf16, #tpu.memory_space<vmem>>, vector<64x128xbf16>
    %cst = arith.constant dense<0.000000e+00> : vector<64x256xf32>
    %12 = tpu.matmul %11, %6, %cst {dimension_numbers = #tpu.dot_dimension_numbers<[1], [0], [0], [1], [0, 0, 1, 1], [], []>} : vector<64x128xbf16>, vector<128x256xbf16>, vector<64x256xf32> -> vector<64x256xf32>
    %13 = vector.broadcast %10 : vector<1x256xf32> to vector<64x256xf32>
    %14 = arith.addf %12, %13 : vector<64x256xf32>
    %cst_5 = arith.constant 5.000000e-01 : f32
    %15 = vector.broadcast %cst_5 : f32 to vector<64x256xf32>
    %16 = arith.mulf %15, %14 : vector<64x256xf32>
    %cst_6 = arith.constant 4.471500e-02 : f32
    %17 = vector.broadcast %cst_6 : f32 to vector<64x256xf32>
    %18 = arith.mulf %17, %14 : vector<64x256xf32>
    %19 = arith.mulf %18, %14 : vector<64x256xf32>
    %20 = arith.mulf %19, %14 : vector<64x256xf32>
    %21 = arith.addf %14, %20 : vector<64x256xf32>
    %cst_7 = arith.constant 0.797884583 : f32
    %22 = vector.broadcast %cst_7 : f32 to vector<64x256xf32>
    %23 = arith.mulf %22, %21 : vector<64x256xf32>
    %24 = math.tanh %23 : vector<64x256xf32>
    %cst_8 = arith.constant 1.000000e+00 : f32
    %25 = vector.broadcast %cst_8 : f32 to vector<64x256xf32>
    %26 = arith.addf %25, %24 : vector<64x256xf32>
    %27 = arith.mulf %16, %26 : vector<64x256xf32>
    %c0_9 = arith.constant 0 : index
    %c0_10 = arith.constant 0 : index
    %28 = vector.load %arg7[%c0_9, %c0_10] : memref<64x128xf32, #tpu.memory_space<vmem>>, vector<64x128xf32>
    %29 = arith.truncf %27 : vector<64x256xf32> to vector<64x256xbf16>
    %cst_11 = arith.constant dense<0.000000e+00> : vector<64x128xf32>
    %30 = tpu.matmul %29, %8, %cst_11 {dimension_numbers = #tpu.dot_dimension_numbers<[1], [0], [0], [1], [0, 0, 1, 1], [], []>} : vector<64x256xbf16>, vector<256x128xbf16>, vector<64x128xf32> -> vector<64x128xf32>
    %31 = arith.addf %28, %30 : vector<64x128xf32>
    %c0_12 = arith.constant 0 : index
    %c0_13 = arith.constant 0 : index
    %32 = vector.load %arg7[%c0_12, %c0_13] : memref<64x128xf32, #tpu.memory_space<vmem>>, vector<64x128xf32>
    tpu.vector_store %arg7[%c0_12, %c0_13], %31 {strides = array<i32>} : memref<64x128xf32, #tpu.memory_space<vmem>>, vector<64x128xf32>,
    %c1_i32 = arith.constant 1 : i32
    %33 = arith.cmpi eq, %arg1, %c1_i32 : i32
    %34 = arith.extui %33 : i1 to i32
    %c0_i32_14 = arith.constant 0 : i32
    %35 = arith.cmpi ne, %34, %c0_i32_14 : i32
    scf.if %35 {
      %c0_15 = arith.constant 0 : index
      %c0_16 = arith.constant 0 : index
      %36 = vector.load %arg7[%c0_15, %c0_16] : memref<64x128xf32, #tpu.memory_space<vmem>>, vector<64x128xf32>
      %c0_17 = arith.constant 0 : index
      %c0_18 = arith.constant 0 : index
      %37 = vector.load %arg6[%c0_17, %c0_18] : memref<1x128xf32, #tpu.memory_space<vmem>>, vector<1x128xf32>
      %38 = vector.broadcast %37 : vector<1x128xf32> to vector<64x128xf32>
      %39 = arith.addf %36, %38 : vector<64x128xf32>
      %c0_19 = arith.constant 0 : index
      %c0_20 = arith.constant 0 : index
      %40 = vector.load %arg7[%c0_19, %c0_20] : memref<64x128xf32, #tpu.memory_space<vmem>>, vector<64x128xf32>
      tpu.vector_store %arg7[%c0_19, %c0_20], %39 {strides = array<i32>} : memref<64x128xf32, #tpu.memory_space<vmem>>, vector<64x128xf32>,
    } else {
    }
    return
  }
  func.func @transform_0(%arg0: i32, %arg1: i32) -> (i32, i32) {
    %c0_i32 = arith.constant 0 : i32
    %c0_i32_0 = arith.constant 0 : i32
    return %arg0, %c0_i32 : i32, i32
  }
  func.func @transform_1(%arg0: i32, %arg1: i32) -> (i32, i32) {
    %c0_i32 = arith.constant 0 : i32
    %c0_i32_0 = arith.constant 0 : i32
    %c0_i32_1 = arith.constant 0 : i32
    return %c0_i32, %c0_i32_0 : i32, i32
  }
  func.func @transform_2(%arg0: i32, %arg1: i32) -> (i32, i32) {
    %c0_i32 = arith.constant 0 : i32
    %c0_i32_0 = arith.constant 0 : i32
    %c0_i32_1 = arith.constant 0 : i32
    return %c0_i32, %c0_i32_0 : i32, i32
  }
  func.func @transform_3(%arg0: i32, %arg1: i32) -> (i32, i32) {
    %c0_i32 = arith.constant 0 : i32
    %c0_i32_0 = arith.constant 0 : i32
    %c0_i32_1 = arith.constant 0 : i32
    return %c0_i32, %c0_i32_0 : i32, i32
  }
  func.func @transform_4(%arg0: i32, %arg1: i32) -> (i32, i32) {
    %c0_i32 = arith.constant 0 : i32
    %c0_i32_0 = arith.constant 0 : i32
    %c0_i32_1 = arith.constant 0 : i32
    return %c0_i32, %c0_i32_0 : i32, i32
  }
  func.func @transform_5(%arg0: i32, %arg1: i32) -> (i32, i32) {
    %c0_i32 = arith.constant 0 : i32
    %c0_i32_0 = arith.constant 0 : i32
    return %arg0, %c0_i32 : i32, i32
  }
}

</mosaic_0001>

<bundles_post_ra>
// kernel: tpu_custom_call.1
= control target key start
LH: loop header
LB: loop body
LE: loop exit
PB: predicated region body
PF: predicated region fallthrough
CT: control target
= control target key end

     0   :  { %s2052_s0 = inlined_call_operand.hbm [shape: bf16[128,128], index: 0, kind: input, shape index: {}]   ;;  %s2053_s1 = inlined_call_operand.hbm [shape: bf16[128,512], index: 1, kind: input, shape index: {}]   ;;  %s2054_s2 = inlined_call_operand.vmem [shape: f32[1,512], index: 2, kind: input, shape index: {}]   ;;  %s2055_s3 = inlined_call_operand.hbm [shape: bf16[512,128], index: 3, kind: input, shape index: {}]   ;;  %s2056_s4 = inlined_call_operand.vmem [shape: f32[1,128], index: 4, kind: input, shape index: {}]   ;;  %s2057_s5 = inlined_call_operand.hbm [shape: f32[128,128], index: 5, kind: output, shape index: {}]  }
   0x1   :  { %2066 = sst [smem:[#allocation14_spill]] %s2053_s1 }
   0x2   :  { %10 = vsyncpa [#allocation3], 0 }
   0x3   :  { %12 = vsyncpa [#allocation3 + $0x1], 0 }
   0x4   :  { %13 = vsyncpa [#allocation6], 0 }
   0x5   :  { %14 = vsyncpa [#allocation4], 0 }
   0x6   :  { %16 = vsyncpa [#allocation4 + $0x1], 0  ;;  %s1566_s18 = smov 0   ;;  %s1568_s19 = smov 0  }
   0x7   :  { %s1570_s20 = smov 0   ;;  %s1572_s21 = smov 0  }
   0x8   :  { %s1574_s22 = smov 0   ;;  %s1576_s23 = smov 0  }
   0x9   :  { %s1578_s24 = smov 0   ;;  %s1580_s25 = smov 0  }
   0xa LB: > { %2067 = sst [smem:[#allocation12_spill]] %s1494_s18  ;;  %s1048_s26 = sadd.s32 4294967295, %s1522_s25   ;;  %s1522_s25 = sphi %s1580_s25, %s22_s25   ;;  %s1518_s24 = sphi %s1578_s24, %s2094_s24   ;;  %s1514_s23 = sphi %s1576_s23, %s2093_s23   ;;  %s1510_s22 = sphi %s1574_s22, %s2092_s22   ;;  %s1506_s21 = sphi %s1572_s21, %s2091_s21   ;;  %s1502_s20 = sphi %s1570_s20, %s2090_s20   ;;  %s1498_s19 = sphi %s1568_s19, %s2089_s19   ;;  %s1494_s18 = sphi %s1566_s18, %s2088_s18  }
   0xb   : > { %s1049_s27 = sadd.s32 4294967294, %s1522_s25   ;;  %p54_p0 = scmp.ne.s32.totalorder %s1498_s19, %s1494_s18 }
   0xc   : > { %p1610_p1 = scmp.eq.s32.totalorder %s1048_s26, 0  ;;  %p1614_p2 = scmp.eq.s32.totalorder %s1048_s26, 3 }
   0xd   : > { %p168_p3 = scmp.eq.s32.totalorder %s1049_s27, 3  ;;  %p1050_p5 = scmp.ge.s32.totalorder %s1522_s25, 1 }
   0xe   : > { %s2068_s28 = scalar_select %p1610_p1, 1, 0 }
   0xf   : > { %s2069_s29 = scalar_select %p1614_p2, 1, 0 }
  0x10   : > { %p1620_p4 = por %p1610_p1, %p54_p0  ;;  %p1625_p6 = por %p168_p3, %p54_p0 }
  0x11   : > { %p175_p7 = scmp.lt.s32.totalorder %s1522_s25, 5  ;;  %s1524_s8 = smov [#allocation5]  }
  0x12   : > { %s2070_s30 = scalar_select %p1620_p4, 1, 0 }
  0x13   : > { %s2071_s6 = scalar_select %p1625_p6, 1, 0 }
  0x14   : > { %p1630_p8 = pnand %p1050_p5, %p175_p7  ;;  %s187_s9 = sshll.u32 %s1524_s8, 4  ;;  %s188_s9 = int_to_ptr.vmem [resolvable:$true] %s187_s9 }
  0x15   : > { %2072 = sst [smem:[#allocation13_spill]] %s2071_s6  ;;  %s1525_s11 = smov [#allocation7]  }
  0x16   : > { %s2073_s7 = scalar_select %p1630_p8, 1, 0 }
  0x17   : > { %p1163_p9 = pneg %p1630_p8  ;;  %s203_s12 = sshll.u32 %s1525_s11, 4  ;;  %s1642_s12 = int_to_ptr.vmem [resolvable:$true] %s203_s12 }
  0x18   : > { %s2075_s1 = sld [smem:[#allocation14_spill]] }
  0x19   : > { %p1638_p10 = pnand %p1163_p9, %p1610_p1 }
  0x1b   : > { %p1336_p12 = pneg %p1638_p10 }
  0x1e   : > { %s1334_s15 = scalar_lea.hbm %s2075_s1, 4096 }
  0x1f   : > { %p1335_p11 = scmp.ne.s32.totalorder %s2075_s1, %s1334_s15  ;;  %p1341_p3 = scmp.lt.u32.totalorder %s1334_s15, %s2075_s1 }
  0x21   : > { %p1337_p13 = pnand %p1336_p12, %p1335_p11 }
  0x23   : > { %p1338_p0 = pneg %p1337_p13 }
  0x25   : > { %p1343_p5 = pnand %p1341_p3, %p1338_p0 }
  0x27   : > { %1346 = shalt.err (!%p1343_p5)
}
  0x28   : > { %s1347_s8 = scalar_lea.vmem %s188_s9, 4096  ;;  %p1355_p1 = scmp.lt.s32.totalorder %s188_s9, %s188_s9 }
  0x29   : > { %p1348_p7 = scmp.ne.s32.totalorder %s188_s9, %s1347_s8  ;;  %p1356_p4 = scmp.lt.s32.totalorder %s1347_s8, %s1347_s8 }
  0x2b   : > { %p1350_p9 = pnand %p1348_p7, %p1336_p12  ;;  %p1357_p8 = por %p1356_p4, %p1355_p1 }
  0x2d   : > { %p1351_p6 = pneg %p1350_p9 }
  0x2f   : > { %p1358_p2 = pnand %p1357_p8, %p1351_p6 }
  0x31   : > { %1361 = shalt.err (!%p1358_p2)
}
  0x32   : > { %s1526_s11 = smov 256   ;;  %s1527_s13 = smov 16  }
  0x33   : > { %1166 = dma.hbm_to_vmem [thread:$0]  (!%p1638_p10), %s2075_s1, 4096, %s188_s9, [#allocation6], %s1526_s11, %s1526_s11, %s1527_s13  }
  0x34   : > { %s1362_s26 = scalar_lea.hbm %s2055_s3, 4096 }
  0x35   : > { %p1363_p11 = scmp.ne.s32.totalorder %s2055_s3, %s1362_s26  ;;  %p1369_p4 = scmp.lt.u32.totalorder %s1362_s26, %s2055_s3 }
  0x37   : > { %p1365_p1 = pnand %p1363_p11, %p1336_p12 }
  0x39   : > { %p1366_p2 = pneg %p1365_p1 }
  0x3b   : > { %p1371_p6 = pnand %p1369_p4, %p1366_p2 }
  0x3d   : > { %1374 = shalt.err (!%p1371_p6)
}
  0x3e   : > { %s1375_s9 = scalar_lea.vmem %s1642_s12, 4096  ;;  %p1383_p3 = scmp.lt.s32.totalorder %s1642_s12, %s1642_s12 }
  0x3f   : > { %p1376_p8 = scmp.ne.s32.totalorder %s1642_s12, %s1375_s9  ;;  %p1384_p5 = scmp.lt.s32.totalorder %s1375_s9, %s1375_s9 }
  0x41   : > { %p1378_p13 = pnand %p1376_p8, %p1336_p12  ;;  %p1385_p7 = por %p1384_p5, %p1383_p3 }
  0x43   : > { %p1379_p0 = pneg %p1378_p13 }
  0x45   : > { %p1386_p9 = pnand %p1385_p7, %p1379_p0 }
  0x47   : > { %1389 = shalt.err (!%p1386_p9)
}
  0x48   : > { %s2064_s18 = smov 64   ;;  %s2065_s6 = smov 4  }
  0x49   : > { %1169 = dma.hbm_to_vmem [thread:$0]  (!%p1638_p10), %s2055_s3, 4096, %s1642_s12, [#allocation6], %s2064_s18, %s2064_s18, %s2065_s6  }
  0x4a   : > { %s31_s14 = sadd.s32 1, %s1514_s23  ;;  %s34_s15 = sadd.s32 1, %s1518_s24 }
  0x4b   : > { %p32_p12 = scmp.ge.s32.totalorder %s31_s14, 2  ;;  %s41_s16 = sadd.s32 1, %s1502_s20 }
  0x4c   : > { %p48_p11 = scmp.ne.s32.totalorder %s1502_s20, %s1498_s19  ;;  %p49_p1 = scmp.eq.s32.totalorder %s1522_s25, 0 }
  0x4d   : > { %s2096_s14 = smov (%p32_p12, %s31_s14), 0  ;;  %s2098_s15 = smov (!%p32_p12, %s34_s15), %s1518_s24 }
  0x4e   : > { %p1703_p2 = por %p49_p1, %p48_p11  ;;  %p2077_p4 = scmp.ne.s32.totalorder %s2069_s29, 0 }
  0x4f   : > { %p36_p10 = scmp.ge.s32.totalorder %s2098_s15, 2  ;;  %p1180_p8 = scmp.lt.s32.totalorder %s1522_s25, 4 }
  0x50   : > { %p1709_p6 = por %p2077_p4, %p48_p11  ;;  %s220_s12 = sand.u32 1, %s1502_s20  }
  0x51   : > { %s1109_s26 = sshll.u32 %s1518_s24, 9  ;;  %s2100_s15 = smov (%p36_p10, %s2098_s15), 0 }
  0x52   : > { %s1054_s27 = sshll.u32 %s220_s12, 5  ;;  %s38_s8 = ssub.s32 %s1518_s24, %s2100_s15 }
  0x53   : > { %p39_p13 = scmp.eq.s32.totalorder %s38_s8, 0  ;;  %s1723_s13 = scalar_lea.hbm %s2052_s0, %s1109_s26 }
  0x54   : > { %s224_s29 = scalar_lea.vmem [#allocation2], %s1054_s27  ;;  %p1727_p0 = pnand %p1180_p8, %p1703_p2 }
  0x55   : > { %s231_s18 = sshll.u32 %s224_s29, 4  ;;  %s1736_s8 = scalar_lea.sflag [#allocation3], %s220_s12  ;;  %s1734_s18 = int_to_ptr.vmem [resolvable:$true] %s231_s18 }
  0x56   : > { %s1732_s1 = scalar_select %p39_p13, %s1502_s20, %s41_s16  }
  0x57   : > { %s1390_s26 = scalar_lea.hbm %s1723_s13, 512  ;;  %p1392_p5 = pneg %p1727_p0 }
  0x58   : > { %p1391_p3 = scmp.ne.s32.totalorder %s1723_s13, %s1390_s26  ;;  %s1395_s9 = scalar_lea.hbm %s2052_s0, 1024 }
  0x59   : > { %p1396_p12 = scmp.lt.u32.totalorder %s1723_s13, %s2052_s0  ;;  %p1397_p11 = scmp.lt.u32.totalorder %s1395_s9, %s1390_s26 }
  0x5a   : > { %p1393_p7 = pnand %p1392_p5, %p1391_p3  ;;  %p1399_p2 = scmp.lt.u32.totalorder %s1390_s26, %s1723_s13 }
  0x5b   : > { %p1398_p1 = por %p1397_p11, %p1396_p12 }
  0x5c   : > { %p1394_p9 = pneg %p1393_p7 }
  0x5d   : > { %p1400_p4 = por %p1399_p2, %p1398_p1 }
  0x5f   : > { %p1401_p10 = pnand %p1400_p4, %p1394_p9 }
  0x61   : > { %1404 = shalt.err (!%p1401_p10)
}
  0x62   : > { %s1405_s16 = scalar_lea.vmem %s1734_s18, 512  ;;  %s1530_s12 = smov [#allocation2]  }
  0x63   : > { %p1406_p8 = scmp.ne.s32.totalorder %s1734_s18, %s1405_s16  ;;  %s1410_s10 = sshll.u32 %s1530_s12, 4  ;;  %s1411_s10 = int_to_ptr.vmem [resolvable:$false] %s1410_s10 }
  0x64   : > { %s1412_s27 = scalar_lea.vmem %s1411_s10, 1024  ;;  %p1413_p7 = scmp.lt.s32.totalorder %s1734_s18, %s1411_s10 }
  0x65   : > { %p1408_p13 = pnand %p1406_p8, %p1392_p5  ;;  %p1414_p12 = scmp.lt.s32.totalorder %s1412_s27, %s1405_s16 }
  0x67   : > { %p1409_p3 = pneg %p1408_p13  ;;  %p1415_p11 = por %p1414_p12, %p1413_p7 }
  0x69   : > { %p1416_p1 = pnand %p1415_p11, %p1409_p3 }
  0x6b   : > { %1419 = shalt.err (!%p1416_p1)
}
  0x6c   : > { %s2080_s26 = smov 4   ;;  %s2081_s9 = smov 64  }
  0x6d   : > { %1173 = dma.hbm_to_vmem [thread:$0]  (!%p1727_p0), %s1723_s13, 512, %s1734_s18, %s1736_s8, %s2081_s9, %s2081_s9, %s2080_s26  }
  0x6e   : > { %p2082_p5 = scmp.ne.s32.totalorder %s2073_s7, 0 }
  0x6f   : > { %s1770_s11 = sand.u32 (!%p2082_p5), 1, %s1498_s19   ;;  %p2083_p9 = scmp.ne.s32.totalorder (!%p2082_p5), %s2070_s30, 0 }
  0x70   : > { %243 = sbr.rel (%p2082_p5) target bundleno = 697 (0x2b9), region = 40  ;;  %s1058_s29 = sshll.u32 (!%p2082_p5), %s1770_s11, 5 }
  0x71   : > { %s246_s16 = scalar_lea.sflag (!%p2082_p5), [#allocation3], %s1770_s11  ;;  %s1774_s12 = scalar_lea.vmem (!%p2082_p5), [#allocation2], %s1058_s29 }
  0x77   : > { %1481 = dma.done.wait (%p2083_p9), %s246_s16, 512  }
  0x78   : > { %1483 = vsyncadd (%p2083_p9), %s246_s16, 4294966784  ;;  %p2084_p0 = scmp.ne.s32.totalorder %s2068_s28, 0 }
  0x7a   : > { %1485 = dma.done.wait (%p2084_p0), [#allocation6], 8192  }
  0x7b   : > { %1487 = vsyncadd (%p2084_p0), [#allocation6], 4294959104  ;;  %s1061_s7 = sshll.u32 %s1770_s11, 6  ;;  %p1062_p2 = scmp.ne.s32.totalorder %s1506_s21, 0 }
  0x7c   : > { %s1785_s18 = scalar_lea.vmem [#allocation8], %s1061_s7  ;;  %v1531_v0 = vmov (!%p1062_p2), 0.0  }
  0x7d   : > { %290 = sbr.rel (%p1062_p2) target bundleno = 132 (0x84), region = 56  ;;  %291 = vst [vmem:[%s1785_s18] sm:$0xff] (!%p1062_p2), %v1531_v0  ;;  %292 = vst [vmem:[%s1785_s18 + $0x8] sm:$0xff] (!%p1062_p2), %v1531_v0 }
  0x7e   : > { %293 = vst [vmem:[%s1785_s18 + $0x10] sm:$0xff] (!%p1062_p2), %v1531_v0  ;;  %294 = vst [vmem:[%s1785_s18 + $0x18] sm:$0xff] (!%p1062_p2), %v1531_v0 }
  0x7f   : > { %295 = vst [vmem:[%s1785_s18 + $0x20] sm:$0xff] (!%p1062_p2), %v1531_v0  ;;  %296 = vst [vmem:[%s1785_s18 + $0x28] sm:$0xff] (!%p1062_p2), %v1531_v0 }
  0x80   : > { %297 = vst [vmem:[%s1785_s18 + $0x30] sm:$0xff] (!%p1062_p2), %v1531_v0  ;;  %298 = vst [vmem:[%s1785_s18 + $0x38] sm:$0xff] (!%p1062_p2), %v1531_v0 }
  0x84 PF: > { %s1063_s28 = sshll.u32 %s1506_s21, 8  ;;  %v1532_v1 = vmov 0   ;;  %v1282_v18 = vld [vmem:[%s1774_s12] sm:$0xff]   ;;  %v1283_v19 = vld [vmem:[%s1774_s12 + $0x8] sm:$0xff]   ;;  %v1284_v20 = vld [vmem:[%s1774_s12 + $0x10] sm:$0xff]   ;;  %v367_v38 = vlaneseq  ;;  %p1102_p4 = scmp.ne.s32.totalorder %s1506_s21, 1 }
  0x85   : > { %s1797_s30 = sshra.s32 %s1063_s28, 7  ;;  %513 = vmatprep.mubr.bf16.mxu0 %v1532_v1  ;;  %s320_s8 = sshra.s32 %s1063_s28, 3  ;;  %v1285_v21 = vld [vmem:[%s1774_s12 + $0x18] sm:$0xff]  }
  0x86   : > { %s1064_s6 = sshll.u32 %s1797_s30, 2  ;;  %s1065_s10 = sshll.u32 %s320_s8, 2  ;;  %v368_v39 = vshrl.u32 %v367_v38, 7 }
  0x87   : > { %s1800_s13 = scalar_lea.vmem [#allocation5], %s1064_s6  ;;  %s1811_s27 = scalar_lea.vmem [#allocation7], %s1065_s10 }
  0x88   : > { %v1258_v2 = vld [vmem:[%s1800_s13 + $0x4] ss:$16 sps:$4 sm:$0xff]   ;;  %v1260_v3 = vld [vmem:[%s1800_s13] ss:$16 sps:$4 sm:$0xff]   ;;  %v1288_v24 = vld [vmem:[%s1811_s27 + $0x48] sm:$0xff]   ;;  %s356_s29 = scalar_lea.vmem %s2054_s2, %s1797_s30  ;;  %v369_v40 = vsub.s32 0, %v368_v39 }
  0x89   : > { %481 = vmatprep.subr.bf16.mxu0 %v1258_v2  ;;  %v1261_v4 = vld [vmem:[%s1800_s13 + $0x24] ss:$16 sps:$4 sm:$0xff]   ;;  %v1263_v5 = vld [vmem:[%s1800_s13 + $0x20] ss:$16 sps:$4 sm:$0xff]   ;;  %v1289_v25 = vld [vmem:[%s1811_s27 + $0x8] sm:$0xff]   ;;  %v373_v42 = vsub.s32 1, %v368_v39 }
  0x8a   : > { %482 = vmatpush1.bf16.msra.mxu0 %v1260_v3  ;;  %v1264_v6 = vld [vmem:[%s1800_s13 + $0x44] ss:$16 sps:$4 sm:$0xff]   ;;  %v1266_v7 = vld [vmem:[%s1800_s13 + $0x40] ss:$16 sps:$4 sm:$0xff]   ;;  %v1292_v28 = vld [vmem:[%s1811_s27 + $0x58] sm:$0xff]  }
  0x8b   : > { %483 = vmatprep.subr.bf16.mxu0 %v1261_v4  ;;  %v1267_v8 = vld [vmem:[%s1800_s13 + $0x64] ss:$16 sps:$4 sm:$0xff]   ;;  %v1269_v9 = vld [vmem:[%s1800_s13 + $0x60] ss:$16 sps:$4 sm:$0xff]   ;;  %v1293_v29 = vld [vmem:[%s1811_s27 + $0x18] sm:$0xff]  }
  0x8c   : > { %v1270_v10 = vld [vmem:[%s1800_s13 + $0x84] ss:$16 sps:$4 sm:$0xff]   ;;  %v1272_v11 = vld [vmem:[%s1800_s13 + $0x80] ss:$16 sps:$4 sm:$0xff]   ;;  %v1296_v32 = vld [vmem:[%s1811_s27 + $0x68] sm:$0xff]  }
  0x8d   : > { %v1273_v12 = vld [vmem:[%s1800_s13 + $0xa4] ss:$16 sps:$4 sm:$0xff]   ;;  %v1275_v13 = vld [vmem:[%s1800_s13 + $0xa0] ss:$16 sps:$4 sm:$0xff]   ;;  %v1297_v33 = vld [vmem:[%s1811_s27 + $0x28] sm:$0xff]  }
  0x8e   : > { %484 = vmatpush1.bf16.msra.mxu0 %v1263_v5  ;;  %v1276_v14 = vld [vmem:[%s1800_s13 + $0xc4] ss:$16 sps:$4 sm:$0xff]   ;;  %v1278_v15 = vld [vmem:[%s1800_s13 + $0xc0] ss:$16 sps:$4 sm:$0xff]   ;;  %v1300_v36 = vld [vmem:[%s1811_s27 + $0x78] sm:$0xff]  }
  0x8f   : > { %485 = vmatprep.subr.bf16.mxu0 %v1264_v6  ;;  %v1279_v16 = vld [vmem:[%s1800_s13 + $0xe4] ss:$16 sps:$4 sm:$0xff]   ;;  %v1281_v17 = vld [vmem:[%s1800_s13 + $0xe0] ss:$16 sps:$4 sm:$0xff]   ;;  %v1301_v37 = vld [vmem:[%s1811_s27 + $0x38] sm:$0xff]  }
  0x90   : > { %v1286_v22 = vld [vmem:[%s1811_s27 + $0x40] sm:$0xff]   ;;  %v1290_v26 = vld [vmem:[%s1811_s27 + $0x50] sm:$0xff]  }
  0x91   : > { %v1287_v23 = vld [vmem:[%s1811_s27] sm:$0xff]   ;;  %1111 = vmatprep.subr.bf16.mxu1 %v1286_v22  ;;  %v1291_v27 = vld [vmem:[%s1811_s27 + $0x10] sm:$0xff]  }
  0x92   : > { %486 = vmatpush1.bf16.msra.mxu0 %v1266_v7  ;;  %1112 = vmatpush3.bf16.msra.mxu1 %v1287_v23  ;;  %v1294_v30 = vld [vmem:[%s1811_s27 + $0x60] sm:$0xff]   ;;  %v1298_v34 = vld [vmem:[%s1811_s27 + $0x70] sm:$0xff]  }
  0x93   : > { %487 = vmatprep.subr.bf16.mxu0 %v1267_v8  ;;  %1113 = vmatprep.subr.bf16.mxu1 %v1288_v24  ;;  %v1295_v31 = vld [vmem:[%s1811_s27 + $0x20] sm:$0xff]   ;;  %v1299_v35 = vld [vmem:[%s1811_s27 + $0x30] sm:$0xff]  }
  0x94   : > { %v357_v41 = vld [vmem:[%s356_s29] sm:$0x3] }
  0x95   : > { %v1844_v43 = vrot.slane %v357_v41, %v369_v40  ;;  %v1846_v44 = vrot.slane %v357_v41, %v373_v42 }
  0x96   : > { %488 = vmatpush1.bf16.msra.mxu0 %v1269_v9  ;;  %1114 = vmatpush3.bf16.msra.mxu1 %v1289_v25 }
  0x97   : > { %489 = vmatprep.subr.bf16.mxu0 %v1270_v10  ;;  %1115 = vmatprep.subr.bf16.mxu1 %v1290_v26 }
  0x9a   : > { %490 = vmatpush1.bf16.msra.mxu0 %v1272_v11  ;;  %1116 = vmatpush3.bf16.msra.mxu1 %v1291_v27 }
  0x9b   : > { %491 = vmatprep.subr.bf16.mxu0 %v1273_v12  ;;  %1117 = vmatprep.subr.bf16.mxu1 %v1292_v28 }
  0x9e   : > { %492 = vmatpush1.bf16.msra.mxu0 %v1275_v13  ;;  %1118 = vmatpush3.bf16.msra.mxu1 %v1293_v29 }
  0x9f   : > { %493 = vmatprep.subr.bf16.mxu0 %v1276_v14  ;;  %1119 = vmatprep.subr.bf16.mxu1 %v1294_v30 }
  0xa2   : > { %494 = vmatpush1.bf16.msra.mxu0 %v1278_v15  ;;  %1120 = vmatpush3.bf16.msra.mxu1 %v1295_v31 }
  0xa3   : > { %495 = vmatprep.subr.bf16.mxu0 %v1279_v16  ;;  %1121 = vmatprep.subr.bf16.mxu1 %v1296_v32 }
  0xa6   : > { %496 = vmatpush1.bf16.msra.mxu0 %v1281_v17  ;;  %1122 = vmatpush3.bf16.msra.mxu1 %v1297_v33 }
  0xa7   : > { %1123 = vmatprep.subr.bf16.mxu1 %v1298_v34 }
  0xa9   : > { %514 = vmatmul.mubr.bf16.vlgmr.msra.gmra.mrb[0].mxu0 %v1282_v18 }
  0xaa   : > { %523 = vmatprep.mubr.bf16.mxu0 %v1532_v1  ;;  %1124 = vmatpush3.bf16.msra.mxu1 %v1299_v35 }
  0xab   : > { %1125 = vmatprep.subr.bf16.mxu1 %v1300_v36 }
  0xae   : > { %1126 = vmatpush3.bf16.msra.mxu1 %v1301_v37 }
  0xb1   : > { %524 = vmatmul.mubr.bf16.gmra.mrb[4].mxu0 %v1283_v19 }
  0xb2   : > { %533 = vmatprep.mubr.bf16.mxu0 %v1532_v1 }
  0xb9   : > { %534 = vmatmul.mubr.bf16.gmra.mrb[8].mxu0 %v1284_v20 }
  0xba   : > { %543 = vmatprep.mubr.bf16.mxu0 %v1532_v1 }
  0xc1   : > { %544 = vmatmul.mubr.bf16.gmra.mrb[12].mxu0 %v1285_v21 }
 0x17c   : > { %v515_v45 = vpop.f32.mrb[0].mxu0 }
 0x17d   : > { %v516_v46 = vadd.f32 %v515_v45, %v1844_v43  ;;  %v517_v47 = vpop.f32.mrb[1].mxu0 }
 0x17e   : > { %v518_v48 = vadd.f32 %v517_v47, %v1846_v44  ;;  %v519_v49 = vpop.f32.mrb[2].mxu0 }
 0x17f   : > { %v570_v50 = vmul.f32 0.044715, %v516_v46  ;;  %v1851_v51 = vadd.f32 %v519_v49, %v1844_v43  ;;  %v521_v52 = vpop.f32.mrb[3].mxu0  ;;  %v554_v31 = vmul.f32 0.5, %v516_v46 }
 0x180   : > { %v571_v53 = vmul.f32 0.044715, %v518_v48  ;;  %v1854_v54 = vadd.f32 %v521_v52, %v1846_v44  ;;  %v555_v40 = vmul.f32 0.5, %v518_v48 }
 0x181   : > { %v586_v55 = vmul.f32 %v570_v50, %v516_v46  ;;  %v572_v56 = vmul.f32 0.044715, %v1851_v51 }
 0x182   : > { %v573_v57 = vmul.f32 0.044715, %v1854_v54  ;;  %v587_v58 = vmul.f32 %v571_v53, %v518_v48 }
 0x183   : > { %v602_v59 = vmul.f32 %v586_v55, %v516_v46  ;;  %v588_v60 = vmul.f32 %v572_v56, %v1851_v51 }
 0x184   : > { %v525_v61 = vpop.f32.mrb[4].mxu0  ;;  %v589_v62 = vmul.f32 %v573_v57, %v1854_v54  ;;  %v603_v63 = vmul.f32 %v587_v58, %v518_v48 }
 0x185   : > { %v604_v0 = vmul.f32 %v588_v60, %v1851_v51  ;;  %v1862_v1 = vadd.f32 %v525_v61, %v1844_v43  ;;  %v527_v2 = vpop.f32.mrb[5].mxu0  ;;  %v618_v3 = vadd.f32 %v602_v59, %v516_v46  ;;  %v557_v59 = vmul.f32 0.5, %v1854_v54 }
 0x186   : > { %v528_v4 = vadd.f32 %v527_v2, %v1846_v44  ;;  %v529_v5 = vpop.f32.mrb[6].mxu0  ;;  %v605_v6 = vmul.f32 %v589_v62, %v1854_v54  ;;  %v619_v7 = vadd.f32 %v603_v63, %v518_v48  ;;  %v556_v60 = vmul.f32 0.5, %v1851_v51 }
 0x187   : > { %v574_v8 = vmul.f32 0.044715, %v1862_v1  ;;  %v1868_v9 = vadd.f32 %v529_v5, %v1844_v43  ;;  %v531_v10 = vpop.f32.mrb[7].mxu0  ;;  %v620_v11 = vadd.f32 %v604_v0, %v1851_v51  ;;  %v634_v12 = vmul.f32 0.7978846, %v618_v3 }
 0x188   : > { %v575_v13 = vmul.f32 0.044715, %v528_v4  ;;  %v1872_v14 = vadd.f32 %v531_v10, %v1846_v44  ;;  %v621_v15 = vadd.f32 %v605_v6, %v1854_v54  ;;  %v635_v16 = vmul.f32 0.7978846, %v619_v7 }
 0x189   : > { %v590_v17 = vmul.f32 %v574_v8, %v1862_v1  ;;  %v576_v18 = vmul.f32 0.044715, %v1868_v9  ;;  %v636_v19 = vmul.f32 0.7978846, %v620_v11  ;;  %1302 = vtanh.f32 %v634_v12 }
 0x18a   : > { %v591_v20 = vmul.f32 %v575_v13, %v528_v4  ;;  %v577_v21 = vmul.f32 0.044715, %v1872_v14  ;;  %v637_v22 = vmul.f32 0.7978846, %v621_v15  ;;  %1304 = vtanh.f32 %v635_v16 }
 0x18b   : > { %v606_v23 = vmul.f32 %v590_v17, %v1862_v1  ;;  %v592_v24 = vmul.f32 %v576_v18, %v1868_v9  ;;  %1306 = vtanh.f32 %v636_v19  ;;  %v559_v2 = vmul.f32 0.5, %v528_v4 }
 0x18c   : > { %v607_v25 = vmul.f32 %v591_v20, %v528_v4  ;;  %v593_v26 = vmul.f32 %v577_v21, %v1872_v14  ;;  %v535_v27 = vpop.f32.mrb[8].mxu0  ;;  %1308 = vtanh.f32 %v637_v22 }
 0x18d   : > { %v608_v28 = vmul.f32 %v592_v24, %v1868_v9  ;;  %v1883_v29 = vadd.f32 %v535_v27, %v1844_v43  ;;  %v537_v30 = vpop.f32.mrb[9].mxu0  ;;  %v622_v36 = vadd.f32 %v606_v23, %v1862_v1 }
 0x18e   : > { %v609_v32 = vmul.f32 %v593_v26, %v1872_v14  ;;  %v1887_v33 = vadd.f32 %v537_v30, %v1846_v44  ;;  %v539_v34 = vpop.f32.mrb[10].mxu0  ;;  %v623_v35 = vadd.f32 %v607_v25, %v528_v4 }
 0x18f   : > { %v578_v37 = vmul.f32 0.044715, %v1883_v29  ;;  %v1892_v38 = vadd.f32 %v539_v34, %v1844_v43  ;;  %v541_v39 = vpop.f32.mrb[11].mxu0  ;;  %v624_v41 = vadd.f32 %v608_v28, %v1868_v9  ;;  %v638_v52 = vmul.f32 0.7978846, %v622_v36 }
 0x190   : > { %v579_v42 = vmul.f32 0.044715, %v1887_v33  ;;  %v1897_v45 = vadd.f32 %v541_v39, %v1846_v44  ;;  %v625_v46 = vadd.f32 %v609_v32, %v1872_v14  ;;  %v639_v47 = vmul.f32 0.7978846, %v623_v35 }
 0x191   : > { %v594_v49 = vmul.f32 %v578_v37, %v1883_v29  ;;  %v580_v50 = vmul.f32 0.044715, %v1892_v38  ;;  %v640_v53 = vmul.f32 0.7978846, %v624_v41  ;;  %v558_v39 = vmul.f32 0.5, %v1862_v1 }
 0x192   : > { %v595_v55 = vmul.f32 %v579_v42, %v1887_v33  ;;  %v581_v48 = vmul.f32 0.044715, %v1897_v45  ;;  %v641_v56 = vmul.f32 0.7978846, %v625_v46  ;;  %1310 = vtanh.f32 %v639_v47 }
 0x193   : > { %v1303_v57 = vpop.eup %1302  ;;  %v596_v58 = vmul.f32 %v580_v50, %v1892_v38  ;;  %1312 = vtanh.f32 %v638_v52  ;;  %v610_v51 = vmul.f32 %v594_v49, %v1883_v29 }
 0x194   : > { %v1305_v61 = vpop.eup %1304  ;;  %v597_v62 = vmul.f32 %v581_v48, %v1897_v45  ;;  %v545_v63 = vpop.f32.mrb[12].mxu0  ;;  %v666_v0 = vadd.f32 1.0, %v1303_v57  ;;  %1314 = vtanh.f32 %v641_v56  ;;  %v611_v5 = vmul.f32 %v595_v55, %v1887_v33 }
 0x195   : > { %v1307_v3 = vpop.eup %1306  ;;  %v1910_v6 = vadd.f32 %v545_v63, %v1844_v43  ;;  %v547_v7 = vpop.f32.mrb[13].mxu0  ;;  %v667_v8 = vadd.f32 1.0, %v1305_v61  ;;  %1316 = vtanh.f32 %v640_v53  ;;  %v612_v13 = vmul.f32 %v596_v58, %v1892_v38 }
 0x196   : > { %v1309_v54 = vpop.eup %1308  ;;  %v613_v10 = vmul.f32 %v597_v62, %v1897_v45  ;;  %v1915_v11 = vadd.f32 %v547_v7, %v1846_v44  ;;  %v549_v12 = vpop.f32.mrb[14].mxu0  ;;  %v668_v4 = vadd.f32 1.0, %v1307_v3  ;;  %v682_v21 = vmul.f32 %v666_v0, %v554_v31 }
 0x197   : > { %v582_v15 = vmul.f32 0.044715, %v1910_v6  ;;  %v1920_v16 = vadd.f32 %v549_v12, %v1844_v43  ;;  %v551_v17 = vpop.f32.mrb[15].mxu0  ;;  %v669_v18 = vadd.f32 1.0, %v1309_v54  ;;  %v683_v24 = vmul.f32 %v667_v8, %v555_v40 }
 0x198   : > { %v583_v19 = vmul.f32 0.044715, %v1915_v11  ;;  %v1924_v20 = vadd.f32 %v551_v17, %v1846_v44  ;;  %v684_v22 = vmul.f32 %v668_v4, %v556_v60  ;;  %v627_v26 = vadd.f32 %v611_v5, %v1887_v33 }
 0x199   : > { %v584_v23 = vmul.f32 0.044715, %v1920_v16  ;;  %v685_v25 = vmul.f32 %v669_v18, %v557_v59  ;;  %v629_v30 = vadd.f32 %v613_v10, %v1897_v45  ;;  %v598_v32 = vmul.f32 %v582_v15, %v1910_v6 }
 0x19a   : > { %v599_v27 = vmul.f32 %v583_v19, %v1915_v11  ;;  %v585_v43 = vmul.f32 0.044715, %v1924_v20  ;;  %v706_v28 = vpack.c.bf16 %v684_v22, %v682_v21  ;;  %v561_v44 = vmul.f32 0.5, %v1872_v14 }
 0x19b   : > { %v707_v34 = vpack.c.bf16 %v685_v25, %v683_v24  ;;  %v643_v31 = vmul.f32 0.7978846, %v627_v26  ;;  %v600_v36 = vmul.f32 %v584_v23, %v1920_v16  ;;  %v645_v40 = vmul.f32 0.7978846, %v629_v30 }
 0x19c   : > { %v1311_v35 = vpop.eup %1310  ;;  %v601_v37 = vmul.f32 %v585_v43, %v1924_v20  ;;  %v615_v42 = vmul.f32 %v599_v27, %v1915_v11  ;;  %v626_v47 = vadd.f32 %v610_v51, %v1883_v29  ;;  %v628_v52 = vadd.f32 %v612_v13, %v1892_v38 }
 0x19d   : > { %v1313_v41 = vpop.eup %1312  ;;  %842 = vmatprep.mubr.bf16.mxu1 %v707_v34  ;;  %v671_v46 = vadd.f32 1.0, %v1311_v35  ;;  %1318 = vtanh.f32 %v643_v31  ;;  %v614_v1 = vmul.f32 %v598_v32, %v1910_v6  ;;  %v560_v48 = vmul.f32 0.5, %v1868_v9 }
 0x19e   : > { %v1315_v49 = vpop.eup %1314  ;;  %v617_v14 = vmul.f32 %v601_v37, %v1924_v20  ;;  %843 = vmatmul.mubr.bf16.vlgmr.msra.gmra.mrb[0].mxu1 %v706_v28  ;;  %v670_v50 = vadd.f32 1.0, %v1313_v41  ;;  %1320 = vtanh.f32 %v645_v40  ;;  %v642_v56 = vmul.f32 0.7978846, %v626_v47 }
 0x19f   : > { %v1317_v53 = vpop.eup %1316  ;;  %v673_v55 = vadd.f32 1.0, %v1315_v49  ;;  %v616_v57 = vmul.f32 %v600_v36, %v1920_v16  ;;  %v687_v58 = vmul.f32 %v671_v46, %v559_v2  ;;  %v644_v60 = vmul.f32 0.7978846, %v628_v52 }
 0x1a0   : > { %v672_v59 = vadd.f32 1.0, %v1317_v53  ;;  %1322 = vtanh.f32 %v642_v56  ;;  %v631_v62 = vadd.f32 %v615_v42, %v1915_v11  ;;  %v633_v63 = vadd.f32 %v617_v14, %v1924_v20  ;;  %v698_v14 = vld [vmem:[%s1785_s18] sm:$0xff]  ;;  %v699_v53 = vld [vmem:[%s1785_s18 + $0x8] sm:$0xff] }
 0x1a1   : > { %v689_v61 = vmul.f32 %v673_v55, %v561_v44  ;;  %v686_v0 = vmul.f32 %v670_v50, %v558_v39  ;;  %1324 = vtanh.f32 %v644_v60  ;;  %v630_v9 = vadd.f32 %v614_v1, %v1910_v6 }
 0x1a2   : > { %v688_v3 = vmul.f32 %v672_v59, %v560_v48  ;;  %v647_v7 = vmul.f32 0.7978846, %v631_v62  ;;  %v649_v8 = vmul.f32 0.7978846, %v633_v63  ;;  %v632_v51 = vadd.f32 %v616_v57, %v1920_v16  ;;  %v700_v57 = vld [vmem:[%s1785_s18 + $0x10] sm:$0xff] }
 0x1a3   : > { %v709_v5 = vpack.c.bf16 %v689_v61, %v687_v58  ;;  %v646_v2 = vmul.f32 0.7978846, %v630_v9  ;;  %v563_v15 = vmul.f32 0.5, %v1887_v33  ;;  %v565_v17 = vmul.f32 0.5, %v1897_v45  ;;  %v701_v61 = vld [vmem:[%s1785_s18 + $0x18] sm:$0xff] }
 0x1a4   : > { %v708_v54 = vpack.c.bf16 %v688_v3, %v686_v0  ;;  %1326 = vtanh.f32 %v647_v7  ;;  %v648_v10 = vmul.f32 0.7978846, %v632_v51  ;;  %v562_v26 = vmul.f32 0.5, %v1883_v29  ;;  %v702_v7 = vld [vmem:[%s1785_s18 + $0x20] sm:$0xff]  ;;  %v703_v51 = vld [vmem:[%s1785_s18 + $0x28] sm:$0xff] }
 0x1a5   : > { %850 = vmatprep.mubr.bf16.mxu1 %v709_v5  ;;  %1328 = vtanh.f32 %v649_v8  ;;  %v564_v27 = vmul.f32 0.5, %v1892_v38  ;;  %v567_v31 = vmul.f32 0.5, %v1915_v11  ;;  %v569_v35 = vmul.f32 0.5, %v1924_v20 }
 0x1a6   : > { %851 = vmatmul.mubr.bf16.gmra.mrb[4].mxu1 %v708_v54  ;;  %1330 = vtanh.f32 %v646_v2  ;;  %v566_v29 = vmul.f32 0.5, %v1910_v6  ;;  %v568_v41 = vmul.f32 0.5, %v1920_v16 }
 0x1a7   : > { %v1319_v12 = vpop.eup %1318  ;;  %1332 = vtanh.f32 %v648_v10 }
 0x1a8   : > { %v1321_v4 = vpop.eup %1320  ;;  %v675_v13 = vadd.f32 1.0, %v1319_v12 }
 0x1a9   : > { %v677_v18 = vadd.f32 1.0, %v1321_v4 }
 0x1aa   : > { %v1323_v19 = vpop.eup %1322  ;;  %v691_v21 = vmul.f32 %v675_v13, %v563_v15  ;;  %v704_v15 = vld [vmem:[%s1785_s18 + $0x30] sm:$0xff] }
 0x1ab   : > { %v693_v22 = vmul.f32 %v677_v18, %v565_v17  ;;  %v1325_v23 = vpop.eup %1324  ;;  %v674_v24 = vadd.f32 1.0, %v1323_v19 }
 0x1ac   : > { %v676_v43 = vadd.f32 1.0, %v1325_v23 }
 0x1ad   : > { %v711_v25 = vpack.c.bf16 %v693_v22, %v691_v21  ;;  %v690_v30 = vmul.f32 %v674_v24, %v562_v26  ;;  %v705_v21 = vld [vmem:[%s1785_s18 + $0x38] sm:$0xff] }
 0x1ae   : > { %v1327_v28 = vpop.eup %1326  ;;  %v692_v32 = vmul.f32 %v676_v43, %v564_v27  ;;  %v1103_v27 = vld [vmem:[%s2056_s4] ss:$0 sm:$0xff] (!%p1102_p4) }
 0x1af   : > { %858 = vmatprep.mubr.bf16.mxu1 %v711_v25  ;;  %v1329_v34 = vpop.eup %1328  ;;  %v679_v33 = vadd.f32 1.0, %v1327_v28 }
 0x1b0   : > { %v1331_v44 = vpop.eup %1330  ;;  %v710_v45 = vpack.c.bf16 %v692_v32, %v690_v30  ;;  %v681_v36 = vadd.f32 1.0, %v1329_v34 }
 0x1b1   : > { %v1333_v37 = vpop.eup %1332  ;;  %v678_v39 = vadd.f32 1.0, %v1331_v44  ;;  %v695_v38 = vmul.f32 %v679_v33, %v567_v31 }
 0x1b2   : > { %859 = vmatmul.mubr.bf16.gmra.mrb[8].mxu1 %v710_v45  ;;  %v697_v40 = vmul.f32 %v681_v36, %v569_v35  ;;  %v680_v42 = vadd.f32 1.0, %v1333_v37 }
 0x1b3   : > { %v694_v47 = vmul.f32 %v678_v39, %v566_v29 }
 0x1b4   : > { %v713_v46 = vpack.c.bf16 %v697_v40, %v695_v38  ;;  %v696_v11 = vmul.f32 %v680_v42, %v568_v41 }
 0x1b6   : > { %866 = vmatprep.mubr.bf16.mxu1 %v713_v46  ;;  %v712_v20 = vpack.c.bf16 %v696_v11, %v694_v47 }
 0x1ba   : > { %867 = vmatmul.mubr.bf16.gmra.mrb[12].mxu1 %v712_v20 }
 0x271   : > { %v1127_v49 = vpop.f32.mrb[0].mxu1 }
 0x272   : > { %v1128_v6 = vpop.f32.mrb[1].mxu1 }
 0x273   : > { %v1129_v50 = vadd.f32 %v1128_v6, %v1127_v49  ;;  %v1130_v52 = vpop.f32.mrb[2].mxu1 }
 0x274   : > { %v1131_v1 = vpop.f32.mrb[3].mxu1 }
 0x275   : > { %v875_v16 = vadd.f32 %v1129_v50, %v698_v14  ;;  %v1132_v55 = vadd.f32 %v1131_v1, %v1130_v52 }
 0x277   : > { %883 = vst [vmem:[%s1785_s18] sm:$0xff] %v875_v16  ;;  %v876_v48 = vadd.f32 %v1132_v55, %v699_v53 }
 0x279   : > { %884 = vst [vmem:[%s1785_s18 + $0x8] sm:$0xff] %v876_v48  ;;  %v1133_v56 = vpop.f32.mrb[4].mxu1 }
 0x27a   : > { %v1134_v58 = vpop.f32.mrb[5].mxu1 }
 0x27b   : > { %v1135_v59 = vadd.f32 %v1134_v58, %v1133_v56  ;;  %v1136_v60 = vpop.f32.mrb[6].mxu1 }
 0x27c   : > { %v1137_v62 = vpop.f32.mrb[7].mxu1 }
 0x27d   : > { %v877_v63 = vadd.f32 %v1135_v59, %v700_v57  ;;  %v1138_v0 = vadd.f32 %v1137_v62, %v1136_v60 }
 0x27e   : > { %v895_v26 = vld [vmem:[%s1785_s18] sm:$0xff] (!%p1102_p4) }
 0x27f   : > { %885 = vst [vmem:[%s1785_s18 + $0x10] sm:$0xff] %v877_v63  ;;  %v878_v3 = vadd.f32 %v1138_v0, %v701_v61  ;;  %v910_v28 = vadd.f32 (!%p1102_p4), %v1103_v27, %v895_v26 }
 0x280   : > { %v896_v43 = vld [vmem:[%s1785_s18 + $0x8] sm:$0xff] (!%p1102_p4) }
 0x281   : > { %886 = vst [vmem:[%s1785_s18 + $0x18] sm:$0xff] %v878_v3  ;;  %v911_v30 = vadd.f32 (!%p1102_p4), %v1103_v27, %v896_v43  ;;  %918 = vst [vmem:[%s1785_s18] sm:$0xff] (!%p1102_p4), %v910_v28 }
 0x283   : > { %919 = vst [vmem:[%s1785_s18 + $0x8] sm:$0xff] (!%p1102_p4), %v911_v30 }
 0x285   : > { %v1139_v5 = vpop.f32.mrb[8].mxu1 }
 0x286   : > { %v1140_v8 = vpop.f32.mrb[9].mxu1  ;;  %v897_v32 = vld [vmem:[%s1785_s18 + $0x10] sm:$0xff] (!%p1102_p4) }
 0x287   : > { %v1141_v9 = vadd.f32 %v1140_v8, %v1139_v5  ;;  %v1142_v54 = vpop.f32.mrb[10].mxu1  ;;  %v912_v44 = vadd.f32 (!%p1102_p4), %v1103_v27, %v897_v32 }
 0x288   : > { %v1143_v2 = vpop.f32.mrb[11].mxu1  ;;  %v898_v34 = vld [vmem:[%s1785_s18 + $0x18] sm:$0xff] (!%p1102_p4) }
 0x289   : > { %v879_v10 = vadd.f32 %v1141_v9, %v702_v7  ;;  %v1144_v12 = vadd.f32 %v1143_v2, %v1142_v54  ;;  %v913_v45 = vadd.f32 (!%p1102_p4), %v1103_v27, %v898_v34  ;;  %920 = vst [vmem:[%s1785_s18 + $0x10] sm:$0xff] (!%p1102_p4), %v912_v44 }
 0x28b   : > { %887 = vst [vmem:[%s1785_s18 + $0x20] sm:$0xff] %v879_v10  ;;  %v880_v4 = vadd.f32 %v1144_v12, %v703_v51  ;;  %921 = vst [vmem:[%s1785_s18 + $0x18] sm:$0xff] (!%p1102_p4), %v913_v45 }
 0x28d   : > { %888 = vst [vmem:[%s1785_s18 + $0x28] sm:$0xff] %v880_v4  ;;  %v1145_v13 = vpop.f32.mrb[12].mxu1 }
 0x28e   : > { %v1146_v17 = vpop.f32.mrb[13].mxu1 }
 0x28f   : > { %v1147_v18 = vadd.f32 %v1146_v17, %v1145_v13  ;;  %v1148_v19 = vpop.f32.mrb[14].mxu1  ;;  %894 = sbr.rel (%p1102_p4) target bundleno = 672 (0x2a0), region = 60 }
 0x290   : > { %v1149_v22 = vpop.f32.mrb[15].mxu1 }
 0x291   : > { %v881_v23 = vadd.f32 %v1147_v18, %v704_v15  ;;  %v1150_v24 = vadd.f32 %v1149_v22, %v1148_v19 }
 0x292   : > { %v899_v33 = vld [vmem:[%s1785_s18 + $0x20] sm:$0xff] (!%p1102_p4) }
 0x293   : > { %889 = vst [vmem:[%s1785_s18 + $0x30] sm:$0xff] %v881_v23  ;;  %v882_v25 = vadd.f32 %v1150_v24, %v705_v21  ;;  %v914_v31 = vadd.f32 (!%p1102_p4), %v1103_v27, %v899_v33 }
 0x294   : > { %v900_v35 = vld [vmem:[%s1785_s18 + $0x28] sm:$0xff] (!%p1102_p4) }
 0x295   : > { %890 = vst [vmem:[%s1785_s18 + $0x38] sm:$0xff] %v882_v25  ;;  %v915_v29 = vadd.f32 (!%p1102_p4), %v1103_v27, %v900_v35  ;;  %922 = vst [vmem:[%s1785_s18 + $0x20] sm:$0xff] (!%p1102_p4), %v914_v31 }
 0x297   : > { %923 = vst [vmem:[%s1785_s18 + $0x28] sm:$0xff] %v915_v29 }
 0x29a   : > { %v901_v36 = vld [vmem:[%s1785_s18 + $0x30] sm:$0xff] }
 0x29b   : > { %v916_v39 = vadd.f32 %v1103_v27, %v901_v36 }
 0x29c   : > { %v902_v37 = vld [vmem:[%s1785_s18 + $0x38] sm:$0xff] }
 0x29d   : > { %v917_v38 = vadd.f32 %v1103_v27, %v902_v37  ;;  %924 = vst [vmem:[%s1785_s18 + $0x30] sm:$0xff] %v916_v39 }
 0x29f   : > { %925 = vst [vmem:[%s1785_s18 + $0x38] sm:$0xff] %v917_v38 }
 0x2a0 PF: > { %s1110_s21 = sshll.u32 %s1510_s22, 10  ;;  %s940_s6 = sshll.u32 %s1785_s18, 4  ;;  %s1998_s6 = int_to_ptr.vmem [resolvable:$true] %s940_s6 }
 0x2a1   : > { %s1995_s30 = scalar_lea.hbm %s2057_s5, %s1110_s21  ;;  %s927_s13 = scalar_lea.sflag [#allocation4], %s1770_s11 }
 0x2a2   : > { %s1420_s8 = scalar_lea.vmem %s1998_s6, 1024  ;;  %s1533_s10 = smov [#allocation8]  }
 0x2a3   : > { %p1421_p10 = scmp.ne.s32.totalorder %s1998_s6, %s1420_s8  ;;  %s1424_s27 = sshll.u32 %s1533_s10, 4  ;;  %s1425_s27 = int_to_ptr.vmem [resolvable:$false] %s1424_s27 }
 0x2a4   : > { %s1426_s22 = scalar_lea.vmem %s1425_s27, 2048  ;;  %p1427_p3 = scmp.lt.s32.totalorder %s1998_s6, %s1425_s27 }
 0x2a5   : > { %p1422_p8 = pnand %p1421_p10, %p1709_p6  ;;  %p1428_p7 = scmp.lt.s32.totalorder %s1426_s22, %s1420_s8 }
 0x2a7   : > { %p1423_p13 = pneg %p1422_p8  ;;  %p1429_p12 = por %p1428_p7, %p1427_p3 }
 0x2a9   : > { %p1430_p11 = pnand %p1429_p12, %p1423_p13 }
 0x2ab   : > { %1433 = shalt.err (!%p1430_p11)
}
 0x2ac   : > { %s1434_s18 = scalar_lea.hbm %s1995_s30, 1024  ;;  %s1438_s29 = scalar_lea.hbm %s2057_s5, 2048 }
 0x2ad   : > { %p1435_p1 = scmp.ne.s32.totalorder %s1995_s30, %s1434_s18  ;;  %p1439_p0 = scmp.lt.u32.totalorder %s1995_s30, %s2057_s5 }
 0x2ae   : > { %p1440_p2 = scmp.lt.u32.totalorder %s1438_s29, %s1434_s18  ;;  %p1442_p10 = scmp.lt.u32.totalorder %s1434_s18, %s1995_s30 }
 0x2af   : > { %p1436_p5 = pnand %p1435_p1, %p1709_p6 }
 0x2b0   : > { %p1441_p4 = por %p1440_p2, %p1439_p0 }
 0x2b1   : > { %p1437_p9 = pneg %p1436_p5 }
 0x2b2   : > { %p1443_p8 = por %p1442_p10, %p1441_p4 }
 0x2b4   : > { %p1444_p13 = pnand %p1443_p8, %p1437_p9 }
 0x2b6   : > { %1447 = shalt.err (!%p1444_p13)
}
 0x2b7   : > { %s1534_s21 = smov 128   ;;  %s1535_s7 = smov 8  }
 0x2b8   : > { %1161 = dma.vmem_to_hbm [thread:$0]  (%p1709_p6), %s1998_s6, 1024, %s1995_s30, %s927_s13, %s1534_s21, %s1534_s21, %s1535_s7  }
 0x2b9 PF: > { %s2085_s28 = sld [smem:[#allocation12_spill]]  ;;  %s2086_s8 = sld [smem:[#allocation13_spill]] }
 0x2ba   : > { %p1183_p3 = scmp.ge.s32.totalorder %s1522_s25, 2 }
 0x2bf   : > { %s955_s10 = sand.u32 1, %s2085_s28   ;;  %p2087_p7 = scmp.ne.s32.totalorder %s2086_s8, 0 }
 0x2c0   : > { %s956_s27 = scalar_lea.sflag [#allocation4], %s955_s10 }
 0x2c1   : > { %p1175_p12 = pnand %p1183_p3, %p2087_p7 }
 0x2c3   : > { %1489 = dma.done.wait (!%p1175_p12), %s956_s27, 1024  }
 0x2c4   : > { %1491 = vsyncadd (!%p1175_p12), %s956_s27, 4294966272  ;;  %s22_s25 = sadd.s32 1, %s1522_s25   ;;  %s2088_s18 = smov %s1498_s19 }
 0x2c5   : > { %p19_p11 = scmp.ge.s32.totalorder %s22_s25, 6   ;;  %s2089_s19 = smov %s1502_s20 }
 0x2c6   : > { %s2090_s20 = smov %s1732_s1  ;;  %s2091_s21 = smov %s1514_s23 }
 0x2c7   : > { %s2092_s22 = smov %s1518_s24  ;;  %s2093_s23 = smov %s2096_s14 }
 0x2c8   : > { %s2094_s24 = smov %s2100_s15  ;;  %21 = sbr.rel (!%p19_p11) target bundleno = 10 (0xa), region = 104 }
 0x2cf   :  { %961 = vsyncpa [#allocation3], 1 }
 0x2d0   :  { %963 = vsyncpa [#allocation3 + $0x1], 1 }
 0x2d1   :  { %964 = vsyncpa [#allocation6], 1 }
 0x2d2   :  { %965 = vsyncpa [#allocation4], 1 }
 0x2d3   :  { %967 = vsyncpa [#allocation4 + $0x1], 1 }

</bundles_post_ra>
